<compile_context>
chip_gen: v5e
topology: v5e:2x2
jax: 0.10.0
libtpu: 0.0.40
codegen_flags: <defaults>
</compile_context>

<pallas_src>
import functools

import jax
import jax.numpy as jnp
from jax.experimental import pallas as pl
from jax.experimental.pallas import tpu as pltpu

LANE = 128        # padded hidden width (120/84 -> 128); do NOT pad beyond 128
TB_MAX = 2048     # max batch tile; working set stays a few MiB even at 2048


def _round_up(x, m):
    return ((x + m - 1) // m) * m


def qnetwork_kernel(x_ref, w1_ref, b1_ref, w2_ref, b2_ref, w3_ref, b3_ref, o_ref):
    # One (tb, obs_dim) batch tile per grid step; weights/biases are VMEM-resident.
    x = x_ref[...]                                            # (tb, obs_dim) f32
    # Tiny-K (K=obs_dim) first matmul stays f32.
    h1 = jnp.dot(x, w1_ref[...], preferred_element_type=jnp.float32) + b1_ref[...]
    h1 = jnp.maximum(h1, 0.0)
    # Big matmuls: bf16 operands on the MXU, f32 accumulation, f32 bias/ReLU.
    h2 = jnp.dot(h1.astype(jnp.bfloat16), w2_ref[...],
                 preferred_element_type=jnp.float32) + b2_ref[...]
    h2 = jnp.maximum(h2, 0.0)
    q = jnp.dot(h2.astype(jnp.bfloat16), w3_ref[...],
                preferred_element_type=jnp.float32) + b3_ref[...]
    o_ref[...] = q.astype(o_ref.dtype)                        # (tb, num_actions)


@functools.partial(jax.jit, static_argnames=("num_actions",))
def qnetwork_forward(x, params, *, num_actions):
    """x: [B, obs_dim] float32.  Returns [B, num_actions] float32 Q-values."""
    w1, b1, w2, b2, w3, b3 = (params["w1"], params["b1"], params["w2"],
                              params["b2"], params["w3"], params["b3"])
    B, obs_dim = x.shape
    H = w1.shape[1]
    assert w3.shape[1] == num_actions

    # Batch tiling: big tiles for HBM roofline, but keep >=2 grid steps when the
    # batch allows it so v7x's two TensorCores both get work.  Tiny batches use a
    # full-array block (second-to-last dim == full dim is legal), so no padding.
    if B < 8:
        tb = B
    else:
        b8 = _round_up(B, 8)
        tb = min(TB_MAX, _round_up((b8 + 1) // 2, 8)) if b8 >= 16 else b8
    b_pad = _round_up(B, tb)

    x_in = x if b_pad == B else jnp.pad(x, ((0, b_pad - B), (0, 0)))

    grid = (b_pad // tb,)
    x_spec = pl.BlockSpec((tb, obs_dim), lambda i: (i, 0))
    out_spec = pl.BlockSpec((tb, num_actions), lambda i: (i, 0))
    # Constant block index -> Pallas keeps one resident copy, no per-step re-DMA.
    w_spec = lambda a: pl.BlockSpec(a.shape, lambda i: (0, 0))

    flops = 2 * b_pad * (obs_dim * H + H * H + H * num_actions)
    bytes_accessed = (x_in.size * x_in.dtype.itemsize
                      + sum(a.size * a.dtype.itemsize
                            for a in (w1, b1, w2, b2, w3, b3))
                      + b_pad * num_actions * 4)

    out = pl.pallas_call(
        qnetwork_kernel,
        out_shape=jax.ShapeDtypeStruct((b_pad, num_actions), jnp.float32),
        grid=grid,
        in_specs=[x_spec,
                  w_spec(w1), w_spec(b1),
                  w_spec(w2), w_spec(b2),
                  w_spec(w3), w_spec(b3)],
        out_specs=out_spec,
        compiler_params=pltpu.CompilerParams(
            dimension_semantics=("parallel",)),
        cost_estimate=pl.CostEstimate(flops=flops, transcendentals=0,
                                      bytes_accessed=bytes_accessed),
    )(x_in, w1, b1, w2, b2, w3, b3)

    return out if b_pad == B else out[:B]


def init_qnetwork_params(key, observation_dimensionality, num_actions,
                         hidden_sizes=(120, 84)):
    """nn.Linear-style U(-1/sqrt(fan_in), 1/sqrt(fan_in)) init, stored transposed
    ([in, out]).  Hidden dims are zero-padded to 128 (exact: padded rows/cols are
    zero and survive ReLU as zero); big-layer weights are stored bf16 for the MXU."""
    h1s, h2s = hidden_sizes
    H = LANE
    assert h1s <= H and h2s <= H

    def linear(k, fan_in, fan_out):
        kw, kb = jax.random.split(k)
        bound = 1.0 / (fan_in ** 0.5)
        w = jax.random.uniform(kw, (fan_in, fan_out), jnp.float32, -bound, bound)
        b = jax.random.uniform(kb, (1, fan_out), jnp.float32, -bound, bound)
        return w, b

    k1, k2, k3 = jax.random.split(key, 3)
    w1, b1 = linear(k1, observation_dimensionality, h1s)
    w2, b2 = linear(k2, h1s, h2s)
    w3, b3 = linear(k3, h2s, num_actions)

    return {
        # Layer 1: input dim kept unpadded (tiny-K f32 matmul), hidden padded to 128.
        "w1": jnp.zeros((observation_dimensionality, H), jnp.float32)
                 .at[:, :h1s].set(w1),
        "b1": jnp.zeros((1, H), jnp.float32).at[:, :h1s].set(b1),
        # Layer 2: 128x128 bf16 weights.
        "w2": jnp.zeros((H, H), jnp.float32).at[:h1s, :h2s].set(w2)
                 .astype(jnp.bfloat16),
        "b2": jnp.zeros((1, H), jnp.float32).at[:, :h2s].set(b2),
        # Layer 3: output dim kept unpadded so the kernel writes only real Q columns.
        "w3": jnp.zeros((H, num_actions), jnp.float32).at[:h2s, :].set(w3)
                 .astype(jnp.bfloat16),
        "b3": b3,
    }


if __name__ == "__main__":
    obs_dim = 4        # e.g. CartPole observation dimensionality
    num_actions = 2
    batch = 8

    key = jax.random.PRNGKey(0)
    key_x, key_p, key_x2 = jax.random.split(key, 3)
    x = jax.random.normal(key_x, (batch, obs_dim), dtype=jnp.float32)
    params = init_qnetwork_params(key_p, obs_dim, num_actions)

    q_values = qnetwork_forward(x, params, num_actions=num_actions)
    jax.block_until_ready(q_values)

    # Plain-JAX f32 reference (bf16 weights upcast); only bf16 rounding differs.
    def ref_forward(xx):
        w1 = params["w1"].astype(jnp.float32); b1 = params["b1"]
        w2 = params["w2"].astype(jnp.float32); b2 = params["b2"]
        w3 = params["w3"].astype(jnp.float32); b3 = params["b3"]
        a1 = jnp.maximum(xx @ w1 + b1, 0.0)
        a2 = jnp.maximum(a1 @ w2 + b2, 0.0)
        return a2 @ w3 + b3

    ref = ref_forward(x)
    assert q_values.shape == (batch, num_actions)
    assert jnp.allclose(q_values, ref, atol=5e-2, rtol=5e-2)

    # Second check: non-tile-multiple batch exercises batch padding + a 2-step grid.
    x2 = jax.random.normal(key_x2, (40, obs_dim), dtype=jnp.float32)
    q2 = qnetwork_forward(x2, params, num_actions=num_actions)
    jax.block_until_ready(q2)
    assert q2.shape == (40, num_actions)
    assert jnp.allclose(q2, ref_forward(x2), atol=5e-2, rtol=5e-2)

    print("KERNEL_OK")
</pallas_src>

<mosaic_0001>
module attributes {stable_mosaic.version = 11 : i64} {
  func.func @qnetwork_kernel(%arg0: i32, %arg1: memref<8x4xf32, #tpu.memory_space<vmem>>, %arg2: memref<4x128xf32, #tpu.memory_space<vmem>>, %arg3: memref<1x128xf32, #tpu.memory_space<vmem>>, %arg4: memref<128x128xbf16, #tpu.memory_space<vmem>>, %arg5: memref<1x128xf32, #tpu.memory_space<vmem>>, %arg6: memref<128x2xbf16, #tpu.memory_space<vmem>>, %arg7: memref<1x2xf32, #tpu.memory_space<vmem>>, %arg8: memref<8x2xf32, #tpu.memory_space<vmem>>) attributes {dimension_semantics = [#tpu.dimension_semantics<parallel>], iteration_bounds = array<i64: 1>, scalar_prefetch = 0 : i64, scratch_operands = 0 : i64, tpu.core_type = #tpu.core_type<tc>, window_params = [{transform_indices = @transform_0, window_bounds = array<i64: 8, 4>}, {pipeline_mode = #tpu.pipeline_mode<synchronous>, transform_indices = @transform_1, window_bounds = array<i64: 4, 128>}, {pipeline_mode = #tpu.pipeline_mode<synchronous>, transform_indices = @transform_2, window_bounds = array<i64: 1, 128>}, {pipeline_mode = #tpu.pipeline_mode<synchronous>, transform_indices = @transform_3, window_bounds = array<i64: 128, 128>}, {pipeline_mode = #tpu.pipeline_mode<synchronous>, transform_indices = @transform_4, window_bounds = array<i64: 1, 128>}, {pipeline_mode = #tpu.pipeline_mode<synchronous>, transform_indices = @transform_5, window_bounds = array<i64: 128, 2>}, {pipeline_mode = #tpu.pipeline_mode<synchronous>, transform_indices = @transform_6, window_bounds = array<i64: 1, 2>}, {transform_indices = @transform_7, window_bounds = array<i64: 8, 2>}]} {
    %c0 = arith.constant 0 : index
    %c0_0 = arith.constant 0 : index
    %0 = vector.load %arg1[%c0, %c0_0] : memref<8x4xf32, #tpu.memory_space<vmem>>, vector<8x4xf32>
    %c0_1 = arith.constant 0 : index
    %c0_2 = arith.constant 0 : index
    %1 = vector.load %arg2[%c0_1, %c0_2] : memref<4x128xf32, #tpu.memory_space<vmem>>, vector<4x128xf32>
    %cst = arith.constant dense<0.000000e+00> : vector<8x128xf32>
    %2 = tpu.matmul %0, %1, %cst {dimension_numbers = #tpu.dot_dimension_numbers<[1], [0], [0], [1], [0, 0, 1, 1], [], []>} : vector<8x4xf32>, vector<4x128xf32>, vector<8x128xf32> -> vector<8x128xf32>
    %c0_3 = arith.constant 0 : index
    %c0_4 = arith.constant 0 : index
    %3 = vector.load %arg3[%c0_3, %c0_4] : memref<1x128xf32, #tpu.memory_space<vmem>>, vector<1x128xf32>
    %4 = vector.broadcast %3 : vector<1x128xf32> to vector<8x128xf32>
    %5 = arith.addf %2, %4 : vector<8x128xf32>
    %cst_5 = arith.constant 0.000000e+00 : f32
    %6 = vector.broadcast %cst_5 : f32 to vector<8x128xf32>
    %7 = arith.maximumf %5, %6 : vector<8x128xf32>
    %8 = arith.truncf %7 : vector<8x128xf32> to vector<8x128xbf16>
    %c0_6 = arith.constant 0 : index
    %c0_7 = arith.constant 0 : index
    %9 = vector.load %arg4[%c0_6, %c0_7] : memref<128x128xbf16, #tpu.memory_space<vmem>>, vector<128x128xbf16>
    %cst_8 = arith.constant dense<0.000000e+00> : vector<8x128xf32>
    %10 = tpu.matmul %8, %9, %cst_8 {dimension_numbers = #tpu.dot_dimension_numbers<[1], [0], [0], [1], [0, 0, 1, 1], [], []>} : vector<8x128xbf16>, vector<128x128xbf16>, vector<8x128xf32> -> vector<8x128xf32>
    %c0_9 = arith.constant 0 : index
    %c0_10 = arith.constant 0 : index
    %11 = vector.load %arg5[%c0_9, %c0_10] : memref<1x128xf32, #tpu.memory_space<vmem>>, vector<1x128xf32>
    %12 = vector.broadcast %11 : vector<1x128xf32> to vector<8x128xf32>
    %13 = arith.addf %10, %12 : vector<8x128xf32>
    %cst_11 = arith.constant 0.000000e+00 : f32
    %14 = vector.broadcast %cst_11 : f32 to vector<8x128xf32>
    %15 = arith.maximumf %13, %14 : vector<8x128xf32>
    %16 = arith.truncf %15 : vector<8x128xf32> to vector<8x128xbf16>
    %c0_12 = arith.constant 0 : index
    %c0_13 = arith.constant 0 : index
    %17 = vector.load %arg6[%c0_12, %c0_13] : memref<128x2xbf16, #tpu.memory_space<vmem>>, vector<128x2xbf16>
    %cst_14 = arith.constant dense<0.000000e+00> : vector<8x2xf32>
    %18 = tpu.matmul %16, %17, %cst_14 {dimension_numbers = #tpu.dot_dimension_numbers<[1], [0], [0], [1], [0, 0, 1, 1], [], []>} : vector<8x128xbf16>, vector<128x2xbf16>, vector<8x2xf32> -> vector<8x2xf32>
    %c0_15 = arith.constant 0 : index
    %c0_16 = arith.constant 0 : index
    %19 = vector.load %arg7[%c0_15, %c0_16] : memref<1x2xf32, #tpu.memory_space<vmem>>, vector<1x2xf32>
    %20 = vector.broadcast %19 : vector<1x2xf32> to vector<8x2xf32>
    %21 = arith.addf %18, %20 : vector<8x2xf32>
    %c0_17 = arith.constant 0 : index
    %c0_18 = arith.constant 0 : index
    %22 = vector.load %arg8[%c0_17, %c0_18] : memref<8x2xf32, #tpu.memory_space<vmem>>, vector<8x2xf32>
    tpu.vector_store %arg8[%c0_17, %c0_18], %21 {strides = array<i32>} : memref<8x2xf32, #tpu.memory_space<vmem>>, vector<8x2xf32>,
    return
  }
  func.func @transform_0(%arg0: i32) -> (i32, i32) {
    %c0_i32 = arith.constant 0 : i32
    %c0_i32_0 = arith.constant 0 : i32
    return %arg0, %c0_i32 : i32, i32
  }
  func.func @transform_1(%arg0: i32) -> (i32, i32) {
    %c0_i32 = arith.constant 0 : i32
    %c0_i32_0 = arith.constant 0 : i32
    %c0_i32_1 = arith.constant 0 : i32
    return %c0_i32, %c0_i32_0 : i32, i32
  }
  func.func @transform_2(%arg0: i32) -> (i32, i32) {
    %c0_i32 = arith.constant 0 : i32
    %c0_i32_0 = arith.constant 0 : i32
    %c0_i32_1 = arith.constant 0 : i32
    return %c0_i32, %c0_i32_0 : i32, i32
  }
  func.func @transform_3(%arg0: i32) -> (i32, i32) {
    %c0_i32 = arith.constant 0 : i32
    %c0_i32_0 = arith.constant 0 : i32
    %c0_i32_1 = arith.constant 0 : i32
    return %c0_i32, %c0_i32_0 : i32, i32
  }
  func.func @transform_4(%arg0: i32) -> (i32, i32) {
    %c0_i32 = arith.constant 0 : i32
    %c0_i32_0 = arith.constant 0 : i32
    %c0_i32_1 = arith.constant 0 : i32
    return %c0_i32, %c0_i32_0 : i32, i32
  }
  func.func @transform_5(%arg0: i32) -> (i32, i32) {
    %c0_i32 = arith.constant 0 : i32
    %c0_i32_0 = arith.constant 0 : i32
    %c0_i32_1 = arith.constant 0 : i32
    return %c0_i32, %c0_i32_0 : i32, i32
  }
  func.func @transform_6(%arg0: i32) -> (i32, i32) {
    %c0_i32 = arith.constant 0 : i32
    %c0_i32_0 = arith.constant 0 : i32
    %c0_i32_1 = arith.constant 0 : i32
    return %c0_i32, %c0_i32_0 : i32, i32
  }
  func.func @transform_7(%arg0: i32) -> (i32, i32) {
    %c0_i32 = arith.constant 0 : i32
    %c0_i32_0 = arith.constant 0 : i32
    return %arg0, %c0_i32 : i32, i32
  }
}

</mosaic_0001>

<bundles_post_ra>
// kernel: qnetwork_forward.1
= control target key start
LH: loop header
LB: loop body
LE: loop exit
PB: predicated region body
PF: predicated region fallthrough
CT: control target
= control target key end

     0   :  { %vm36_vm0 = vcmask 1043456   ;;  %vm32_vm1 = vcmask 31744   ;;  %vm226_vm2 = vcmask 15360   ;;  %s423_s1 = inlined_call_operand.vmem [shape: f32[4,128], index: 1, kind: input, shape index: {}]   ;;  %s424_s0 = inlined_call_operand.vmem [shape: f32[8,4], index: 0, kind: input, shape index: {}]   ;;  %s425_s3 = inlined_call_operand.vmem [shape: bf16[128,128], index: 3, kind: input, shape index: {}]   ;;  %s426_s2 = inlined_call_operand.vmem [shape: f32[1,128], index: 2, kind: input, shape index: {}]   ;;  %s427_s4 = inlined_call_operand.vmem [shape: f32[1,128], index: 4, kind: input, shape index: {}]   ;;  %s428_s5 = inlined_call_operand.vmem [shape: bf16[128,2], index: 5, kind: input, shape index: {}]   ;;  %s429_s6 = inlined_call_operand.vmem [shape: f32[1,2], index: 6, kind: input, shape index: {}]   ;;  %s430_s7 = inlined_call_operand.vmem [shape: f32[8,2], index: 7, kind: output, shape index: {}]  }
   0x1   :  { %v27_v0 = vld [vmem:[%s423_s1] sm:$0xf]  ;;  %v305_v2 = vld [vmem:[%s425_s3 + $0x38] sm:$0xff]  ;;  %v304_v3 = vld [vmem:[%s425_s3 + $0x30] sm:$0xff] }
   0x2   :  { %v26_v1 = vld [vmem:[%s424_s0] sm:$0xff]  ;;  %232 = vmatpush.msk.msra.mxu0 %vm36_vm0, %v27_v0  ;;  %130 = vmatpush.bf16.msra.mxu1 %v305_v2  ;;  %v303_v4 = vld [vmem:[%s425_s3 + $0x28] sm:$0xff]  ;;  %v301_v6 = vld [vmem:[%s425_s3 + $0x18] sm:$0xff] }
   0x3   :  { %233 = vmatmul.msk.f32.vlgmr.msra.gmra.mxu0 %vm32_vm1, %v26_v1  ;;  %v302_v5 = vld [vmem:[%s425_s3 + $0x20] sm:$0xff]  ;;  %v300_v7 = vld [vmem:[%s425_s3 + $0x10] sm:$0xff]  ;;  %v299_v8 = vld [vmem:[%s425_s3 + $0x8] sm:$0xff] }
   0x4   :  { %v298_v9 = vld [vmem:[%s425_s3] sm:$0xff]  ;;  %v313_v10 = vld [vmem:[%s428_s5 + $0x38] sm:$0xff]  ;;  %v312_v11 = vld [vmem:[%s428_s5 + $0x30] sm:$0xff] }
   0x5   :  { %213 = vmatpush.bf16.msra.mxu2 %v313_v10  ;;  %v311_v12 = vld [vmem:[%s428_s5 + $0x28] sm:$0xff]  ;;  %v310_v13 = vld [vmem:[%s428_s5 + $0x20] sm:$0xff]  ;;  %v309_v14 = vld [vmem:[%s428_s5 + $0x18] sm:$0xff] }
   0x6   :  { %131 = vmatpush.bf16.msra.mxu1 %v304_v3  ;;  %v308_v15 = vld [vmem:[%s428_s5 + $0x10] sm:$0xff]  ;;  %v314_v16 = vld [vmem:[%s426_s2] ss:$0 sm:$0xff]  ;;  %v307_v21 = vld [vmem:[%s428_s5 + $0x8] sm:$0xff] }
   0x7   :  { %v306_v22 = vld [vmem:[%s428_s5] sm:$0xff] }
   0x8   :  { %v315_v23 = vld [vmem:[%s427_s4] ss:$0 sm:$0xff] }
   0x9   :  { %214 = vmatpush.bf16.msra.mxu2 %v312_v11  ;;  %v316_v29 = vld [vmem:[%s429_s6] ss:$0 sm:$0xff] }
   0xa   :  { %132 = vmatpush.bf16.msra.mxu1 %v303_v4 }
   0xd   :  { %215 = vmatpush.bf16.msra.mxu2 %v311_v12 }
   0xe   :  { %133 = vmatpush.bf16.msra.mxu1 %v302_v5 }
  0x11   :  { %216 = vmatpush.bf16.msra.mxu2 %v310_v13 }
  0x12   :  { %134 = vmatpush.bf16.msra.mxu1 %v301_v6 }
  0x15   :  { %217 = vmatpush.bf16.msra.mxu2 %v309_v14 }
  0x16   :  { %135 = vmatpush.bf16.msra.mxu1 %v300_v7 }
  0x19   :  { %218 = vmatpush.bf16.msra.mxu2 %v308_v15 }
  0x1a   :  { %136 = vmatpush.bf16.msra.mxu1 %v299_v8 }
  0x1d   :  { %219 = vmatpush.bf16.msra.mxu2 %v307_v21 }
  0x1e   :  { %137 = vmatpush.bf16.msra.mxu1 %v298_v9 }
  0x21   :  { %220 = vmatpush.bf16.msra.mxu2 %v306_v22 }
  0x80   :  { %v57_v17 = vpop.f32.mrf.mxu0 }
  0x81   :  { %v58_v18 = vadd.f32 %v314_v16, %v57_v17 }
  0x83   :  { %v60_v19 = vmax.f32 %v58_v18, 0.0 }
  0x85   :  { %v61_v20 = vpack.c.bf16 %v60_v19, %v60_v19 }
  0x87   :  { %138 = vmatmul.bf16.vlgmr.msra.gmra.mxu1 %v61_v20 }
 0x104   :  { %v139_v24 = vpop.f32.mrf.mxu1 }
 0x105   :  { %v140_v25 = vadd.f32 %v315_v23, %v139_v24 }
 0x107   :  { %v143_v26 = vmax.f32 %v140_v25, 0.0 }
 0x109   :  { %v144_v27 = vpack.c.bf16 %v143_v26, %v143_v26 }
 0x10b   :  { %221 = vmatmul.bf16.vlgmr.msra.gmra.mxu2 %v144_v27 }
 0x10c   :  { %v141_v28 = vpop.f32.mrf.mxu1 }
 0x18e   :  { %v222_v30 = vpop.f32.mrf.mxu2 }
 0x18f   :  { %v223_v31 = vadd.f32 %v316_v29, %v222_v30 }
 0x191   :  { %227 = vst.msk [vmem:[%s430_s7] sm:$0xff] %vm226_vm2, %v223_v31 }
 0x196   :  { %v224_v32 = vpop.f32.mrf.mxu2 }

</bundles_post_ra>
